<compile_context>
chip_gen: v6e
topology: v6e:2x2x1
jax: 0.10.0
libtpu: 0.0.40
codegen_flags: <defaults>
</compile_context>

<pallas_src>
import jax
import jax.numpy as jnp
from jax.experimental import pallas as pl
from jax.experimental.pallas import tpu as pltpu


def _round_up(x: int, m: int) -> int:
    return ((x + m - 1) // m) * m


def mlp_deep_residual_kernel(
    x_ref,                 # (TB, D_in_pad)       bf16
    w_in_ref, b_in_ref,    # (D_in_pad, H_pad) bf16, (1, H_pad) f32
    w1_ref, b1_ref,        # (H_pad, H_pad)    bf16, (1, H_pad) f32
    w2_ref, b2_ref,
    w3_ref, b3_ref,
    w_out_ref, b_out_ref,  # (H_pad, C_pad)    bf16, (1, C_pad) f32
    out_ref,               # (TB, C_pad)       f32
):
    x = x_ref[...]

    # Input layer + ReLU (bf16 MXU inputs, f32 accumulation).
    h = jnp.dot(x, w_in_ref[...], preferred_element_type=jnp.float32) + b_in_ref[...]
    h = jnp.maximum(h, 0.0)

    # Residual hidden layers: h = relu(W h + b) + h   (num_layers - 1 = 3, unrolled).
    # h stays in f32 for bias/ReLU/residual; only the matmul inputs are bf16.
    for w_ref, b_ref in ((w1_ref, b1_ref), (w2_ref, b2_ref), (w3_ref, b3_ref)):
        z = jnp.dot(h.astype(w_ref.dtype), w_ref[...],
                    preferred_element_type=jnp.float32) + b_ref[...]
        h = jnp.maximum(z, 0.0) + h

    # Output layer (no activation). C_pad = 128 lanes -> unmasked lane-dense store.
    out_ref[...] = (
        jnp.dot(h.astype(w_out_ref.dtype), w_out_ref[...],
                preferred_element_type=jnp.float32) + b_out_ref[...]
    )


def mlp_classifier_deep_residual(x_nchw, params, *, compute_dtype=jnp.bfloat16):
    """x_nchw: (B, 3, H, W) float32. params: (in, out) weights and (1, out) biases."""
    B = x_nchw.shape[0]
    x_flat = x_nchw.reshape(B, -1)          # matches torch x.view(B, -1) on NCHW
    d_in = x_flat.shape[1]
    hid = params["w_in"].shape[1]
    n_cls = params["w_out"].shape[1]

    LANE, SUB = 128, 8
    d_in_p = _round_up(d_in, LANE)
    hid_p = _round_up(hid, LANE)
    cls_p = _round_up(n_cls, LANE)

    # Batch tile: at least one sublane tile, at most 256 rows per grid step
    # (bigger tiles amortize per-step overhead; footprint stays small: even at
    # d_in=12288 a 256-row bf16 x tile is 6 MiB, double-buffered 12 MiB, plus
    # ~3 MiB of resident weights -> well under the default scoped-VMEM limit).
    tb = min(_round_up(B, SUB), 256)
    b_p = _round_up(B, tb)
    n_tiles = b_p // tb

    def pad2(a, rows, cols, dtype):
        a = a.astype(dtype)
        return jnp.pad(a, ((0, rows - a.shape[0]), (0, cols - a.shape[1])))

    # Zero padding keeps results exact: padded rows/cols of weights and biases
    # are zero, so padded activation lanes stay zero through ReLU + residual.
    xp    = pad2(x_flat,           b_p,    d_in_p, compute_dtype)
    w_in  = pad2(params["w_in"],   d_in_p, hid_p,  compute_dtype)
    b_in  = pad2(params["b_in"],   1,      hid_p,  jnp.float32)
    w1    = pad2(params["w1"],     hid_p,  hid_p,  compute_dtype)
    b1    = pad2(params["b1"],     1,      hid_p,  jnp.float32)
    w2    = pad2(params["w2"],     hid_p,  hid_p,  compute_dtype)
    b2    = pad2(params["b2"],     1,      hid_p,  jnp.float32)
    w3    = pad2(params["w3"],     hid_p,  hid_p,  compute_dtype)
    b3    = pad2(params["b3"],     1,      hid_p,  jnp.float32)
    w_out = pad2(params["w_out"],  hid_p,  cls_p,  compute_dtype)
    b_out = pad2(params["b_out"],  1,      cls_p,  jnp.float32)

    operands = (xp, w_in, b_in, w1, b1, w2, b2, w3, b3, w_out, b_out)

    # Weights / biases: full blocks with constant index_map -> fetched once and
    # resident in VMEM across all batch tiles.
    def rep(shape):
        return pl.BlockSpec(shape, lambda i, _n=len(shape): (0,) * _n)

    in_specs = [pl.BlockSpec((tb, d_in_p), lambda i: (i, 0))] + [
        rep(op.shape) for op in operands[1:]
    ]

    flops = 2 * b_p * (d_in_p * hid_p + 3 * hid_p * hid_p + hid_p * cls_p)
    bytes_accessed = sum(int(op.size) * op.dtype.itemsize for op in operands)
    bytes_accessed += b_p * cls_p * 4  # output

    out_padded = pl.pallas_call(
        mlp_deep_residual_kernel,
        out_shape=jax.ShapeDtypeStruct((b_p, cls_p), jnp.float32),
        grid_spec=pltpu.PrefetchScalarGridSpec(
            num_scalar_prefetch=0,
            grid=(n_tiles,),
            in_specs=in_specs,
            out_specs=pl.BlockSpec((tb, cls_p), lambda i: (i, 0)),
        ),
        compiler_params=pltpu.CompilerParams(
            dimension_semantics=("parallel",),
        ),
        cost_estimate=pl.CostEstimate(
            flops=flops, transcendentals=0, bytes_accessed=bytes_accessed
        ),
    )(*operands)

    return out_padded[:B, :n_cls]


def init_params(key, d_in, hidden_dim, num_classes, num_layers):
    """nn.Linear-style init, U(-1/sqrt(fan_in), 1/sqrt(fan_in)); weights stored (in, out)."""
    params = {}

    def linear(key, fan_in, fan_out):
        kw, kb = jax.random.split(key)
        bound = 1.0 / jnp.sqrt(fan_in)
        w = jax.random.uniform(kw, (fan_in, fan_out), jnp.float32, -bound, bound)
        b = jax.random.uniform(kb, (1, fan_out), jnp.float32, -bound, bound)
        return w, b

    keys = jax.random.split(key, num_layers + 1)
    params["w_in"], params["b_in"] = linear(keys[0], d_in, hidden_dim)
    for i in range(1, num_layers):  # num_layers - 1 hidden layers
        params[f"w{i}"], params[f"b{i}"] = linear(keys[i], hidden_dim, hidden_dim)
    params["w_out"], params["b_out"] = linear(keys[num_layers], hidden_dim, num_classes)
    return params


def reference_forward_f32(x_nchw, params, num_layers):
    """Pure-JAX fp32 reference matching PyTorch forward semantics."""
    x = x_nchw.reshape(x_nchw.shape[0], -1)
    h = jax.nn.relu(x @ params["w_in"] + params["b_in"])
    for i in range(1, num_layers):
        h = jax.nn.relu(h @ params[f"w{i}"] + params[f"b{i}"]) + h
    return h @ params["w_out"] + params["b_out"]


def reference_forward_bf16(x_nchw, params, num_layers):
    """Reference in the same numeric regime as the kernel (bf16 matmul inputs, f32 accum)."""
    dot = lambda a, b: jnp.dot(a.astype(jnp.bfloat16), b.astype(jnp.bfloat16),
                               preferred_element_type=jnp.float32)
    x = x_nchw.reshape(x_nchw.shape[0], -1)
    h = jax.nn.relu(dot(x, params["w_in"]) + params["b_in"])
    for i in range(1, num_layers):
        h = jax.nn.relu(dot(h, params[f"w{i}"]) + params[f"b{i}"]) + h
    return dot(h, params["w_out"]) + params["b_out"]


if __name__ == "__main__":
    # Small shapes consistent with the module: batch=2, 3 channels (RGB),
    # 16x16 spatial, hidden_dim=128 (module default), num_classes=6, num_layers=4.
    B, C, H, W = 2, 3, 16, 16
    hidden_dim, num_classes, num_layers = 128, 6, 4
    d_in = C * H * W  # 768

    key = jax.random.PRNGKey(0)
    kx, kp = jax.random.split(key)
    x = jax.random.normal(kx, (B, C, H, W), dtype=jnp.float32)
    params = init_params(kp, d_in, hidden_dim, num_classes, num_layers)

    out = mlp_classifier_deep_residual(x, params)
    out = jax.block_until_ready(out)

    ref_bf16 = reference_forward_bf16(x, params, num_layers)
    ref_f32 = reference_forward_f32(x, params, num_layers)

    assert out.shape == (B, num_classes)
    # Tight check vs a reference in the same bf16-input / f32-accumulate regime.
    assert jnp.allclose(out, ref_bf16, atol=1e-3, rtol=1e-3), "mismatch vs bf16 reference"
    # Loose check vs full fp32 reference (bf16 matmul inputs introduce ~0.5% error).
    assert jnp.allclose(out, ref_f32, atol=5e-2, rtol=5e-2), "mismatch vs fp32 reference"

    print("KERNEL_OK")
</pallas_src>

<mosaic_0001>
module attributes {stable_mosaic.version = 11 : i64} {
  func.func @mlp_deep_residual_kernel(%arg0: i32, %arg1: memref<8x768xbf16, #tpu.memory_space<vmem>>, %arg2: memref<768x128xbf16, #tpu.memory_space<vmem>>, %arg3: memref<1x128xf32, #tpu.memory_space<vmem>>, %arg4: memref<128x128xbf16, #tpu.memory_space<vmem>>, %arg5: memref<1x128xf32, #tpu.memory_space<vmem>>, %arg6: memref<128x128xbf16, #tpu.memory_space<vmem>>, %arg7: memref<1x128xf32, #tpu.memory_space<vmem>>, %arg8: memref<128x128xbf16, #tpu.memory_space<vmem>>, %arg9: memref<1x128xf32, #tpu.memory_space<vmem>>, %arg10: memref<128x128xbf16, #tpu.memory_space<vmem>>, %arg11: memref<1x128xf32, #tpu.memory_space<vmem>>, %arg12: memref<8x128xf32, #tpu.memory_space<vmem>>) attributes {dimension_semantics = [#tpu.dimension_semantics<parallel>], iteration_bounds = array<i64: 1>, scalar_prefetch = 0 : i64, scratch_operands = 0 : i64, tpu.core_type = #tpu.core_type<tc>, window_params = [{transform_indices = @transform_0, window_bounds = array<i64: 8, 768>}, {pipeline_mode = #tpu.pipeline_mode<synchronous>, transform_indices = @transform_1, window_bounds = array<i64: 768, 128>}, {pipeline_mode = #tpu.pipeline_mode<synchronous>, transform_indices = @transform_2, window_bounds = array<i64: 1, 128>}, {pipeline_mode = #tpu.pipeline_mode<synchronous>, transform_indices = @transform_3, window_bounds = array<i64: 128, 128>}, {pipeline_mode = #tpu.pipeline_mode<synchronous>, transform_indices = @transform_4, window_bounds = array<i64: 1, 128>}, {pipeline_mode = #tpu.pipeline_mode<synchronous>, transform_indices = @transform_5, window_bounds = array<i64: 128, 128>}, {pipeline_mode = #tpu.pipeline_mode<synchronous>, transform_indices = @transform_6, window_bounds = array<i64: 1, 128>}, {pipeline_mode = #tpu.pipeline_mode<synchronous>, transform_indices = @transform_7, window_bounds = array<i64: 128, 128>}, {pipeline_mode = #tpu.pipeline_mode<synchronous>, transform_indices = @transform_8, window_bounds = array<i64: 1, 128>}, {pipeline_mode = #tpu.pipeline_mode<synchronous>, transform_indices = @transform_9, window_bounds = array<i64: 128, 128>}, {pipeline_mode = #tpu.pipeline_mode<synchronous>, transform_indices = @transform_10, window_bounds = array<i64: 1, 128>}, {transform_indices = @transform_11, window_bounds = array<i64: 8, 128>}]} {
    %c0 = arith.constant 0 : index
    %c0_0 = arith.constant 0 : index
    %0 = vector.load %arg1[%c0, %c0_0] : memref<8x768xbf16, #tpu.memory_space<vmem>>, vector<8x768xbf16>
    %c0_1 = arith.constant 0 : index
    %c0_2 = arith.constant 0 : index
    %1 = vector.load %arg2[%c0_1, %c0_2] : memref<768x128xbf16, #tpu.memory_space<vmem>>, vector<768x128xbf16>
    %cst = arith.constant dense<0.000000e+00> : vector<8x128xf32>
    %2 = tpu.matmul %0, %1, %cst {dimension_numbers = #tpu.dot_dimension_numbers<[1], [0], [0], [1], [0, 0, 1, 1], [], []>} : vector<8x768xbf16>, vector<768x128xbf16>, vector<8x128xf32> -> vector<8x128xf32>
    %c0_3 = arith.constant 0 : index
    %c0_4 = arith.constant 0 : index
    %3 = vector.load %arg3[%c0_3, %c0_4] : memref<1x128xf32, #tpu.memory_space<vmem>>, vector<1x128xf32>
    %4 = vector.broadcast %3 : vector<1x128xf32> to vector<8x128xf32>
    %5 = arith.addf %2, %4 : vector<8x128xf32>
    %cst_5 = arith.constant 0.000000e+00 : f32
    %6 = vector.broadcast %cst_5 : f32 to vector<8x128xf32>
    %7 = arith.maximumf %5, %6 : vector<8x128xf32>
    %8 = arith.truncf %7 : vector<8x128xf32> to vector<8x128xbf16>
    %c0_6 = arith.constant 0 : index
    %c0_7 = arith.constant 0 : index
    %9 = vector.load %arg4[%c0_6, %c0_7] : memref<128x128xbf16, #tpu.memory_space<vmem>>, vector<128x128xbf16>
    %cst_8 = arith.constant dense<0.000000e+00> : vector<8x128xf32>
    %10 = tpu.matmul %8, %9, %cst_8 {dimension_numbers = #tpu.dot_dimension_numbers<[1], [0], [0], [1], [0, 0, 1, 1], [], []>} : vector<8x128xbf16>, vector<128x128xbf16>, vector<8x128xf32> -> vector<8x128xf32>
    %c0_9 = arith.constant 0 : index
    %c0_10 = arith.constant 0 : index
    %11 = vector.load %arg5[%c0_9, %c0_10] : memref<1x128xf32, #tpu.memory_space<vmem>>, vector<1x128xf32>
    %12 = vector.broadcast %11 : vector<1x128xf32> to vector<8x128xf32>
    %13 = arith.addf %10, %12 : vector<8x128xf32>
    %cst_11 = arith.constant 0.000000e+00 : f32
    %14 = vector.broadcast %cst_11 : f32 to vector<8x128xf32>
    %15 = arith.maximumf %13, %14 : vector<8x128xf32>
    %16 = arith.addf %15, %7 : vector<8x128xf32>
    %17 = arith.truncf %16 : vector<8x128xf32> to vector<8x128xbf16>
    %c0_12 = arith.constant 0 : index
    %c0_13 = arith.constant 0 : index
    %18 = vector.load %arg6[%c0_12, %c0_13] : memref<128x128xbf16, #tpu.memory_space<vmem>>, vector<128x128xbf16>
    %cst_14 = arith.constant dense<0.000000e+00> : vector<8x128xf32>
    %19 = tpu.matmul %17, %18, %cst_14 {dimension_numbers = #tpu.dot_dimension_numbers<[1], [0], [0], [1], [0, 0, 1, 1], [], []>} : vector<8x128xbf16>, vector<128x128xbf16>, vector<8x128xf32> -> vector<8x128xf32>
    %c0_15 = arith.constant 0 : index
    %c0_16 = arith.constant 0 : index
    %20 = vector.load %arg7[%c0_15, %c0_16] : memref<1x128xf32, #tpu.memory_space<vmem>>, vector<1x128xf32>
    %21 = vector.broadcast %20 : vector<1x128xf32> to vector<8x128xf32>
    %22 = arith.addf %19, %21 : vector<8x128xf32>
    %cst_17 = arith.constant 0.000000e+00 : f32
    %23 = vector.broadcast %cst_17 : f32 to vector<8x128xf32>
    %24 = arith.maximumf %22, %23 : vector<8x128xf32>
    %25 = arith.addf %24, %16 : vector<8x128xf32>
    %26 = arith.truncf %25 : vector<8x128xf32> to vector<8x128xbf16>
    %c0_18 = arith.constant 0 : index
    %c0_19 = arith.constant 0 : index
    %27 = vector.load %arg8[%c0_18, %c0_19] : memref<128x128xbf16, #tpu.memory_space<vmem>>, vector<128x128xbf16>
    %cst_20 = arith.constant dense<0.000000e+00> : vector<8x128xf32>
    %28 = tpu.matmul %26, %27, %cst_20 {dimension_numbers = #tpu.dot_dimension_numbers<[1], [0], [0], [1], [0, 0, 1, 1], [], []>} : vector<8x128xbf16>, vector<128x128xbf16>, vector<8x128xf32> -> vector<8x128xf32>
    %c0_21 = arith.constant 0 : index
    %c0_22 = arith.constant 0 : index
    %29 = vector.load %arg9[%c0_21, %c0_22] : memref<1x128xf32, #tpu.memory_space<vmem>>, vector<1x128xf32>
    %30 = vector.broadcast %29 : vector<1x128xf32> to vector<8x128xf32>
    %31 = arith.addf %28, %30 : vector<8x128xf32>
    %cst_23 = arith.constant 0.000000e+00 : f32
    %32 = vector.broadcast %cst_23 : f32 to vector<8x128xf32>
    %33 = arith.maximumf %31, %32 : vector<8x128xf32>
    %34 = arith.addf %33, %25 : vector<8x128xf32>
    %35 = arith.truncf %34 : vector<8x128xf32> to vector<8x128xbf16>
    %c0_24 = arith.constant 0 : index
    %c0_25 = arith.constant 0 : index
    %36 = vector.load %arg10[%c0_24, %c0_25] : memref<128x128xbf16, #tpu.memory_space<vmem>>, vector<128x128xbf16>
    %cst_26 = arith.constant dense<0.000000e+00> : vector<8x128xf32>
    %37 = tpu.matmul %35, %36, %cst_26 {dimension_numbers = #tpu.dot_dimension_numbers<[1], [0], [0], [1], [0, 0, 1, 1], [], []>} : vector<8x128xbf16>, vector<128x128xbf16>, vector<8x128xf32> -> vector<8x128xf32>
    %c0_27 = arith.constant 0 : index
    %c0_28 = arith.constant 0 : index
    %38 = vector.load %arg11[%c0_27, %c0_28] : memref<1x128xf32, #tpu.memory_space<vmem>>, vector<1x128xf32>
    %39 = vector.broadcast %38 : vector<1x128xf32> to vector<8x128xf32>
    %40 = arith.addf %37, %39 : vector<8x128xf32>
    %c0_29 = arith.constant 0 : index
    %c0_30 = arith.constant 0 : index
    %41 = vector.load %arg12[%c0_29, %c0_30] : memref<8x128xf32, #tpu.memory_space<vmem>>, vector<8x128xf32>
    tpu.vector_store %arg12[%c0_29, %c0_30], %40 {strides = array<i32>} : memref<8x128xf32, #tpu.memory_space<vmem>>, vector<8x128xf32>,
    return
  }
  func.func @transform_0(%arg0: i32) -> (i32, i32) {
    %c0_i32 = arith.constant 0 : i32
    %c0_i32_0 = arith.constant 0 : i32
    return %arg0, %c0_i32 : i32, i32
  }
  func.func @transform_1(%arg0: i32) -> (i32, i32) {
    %c0_i32 = arith.constant 0 : i32
    %c0_i32_0 = arith.constant 0 : i32
    %c0_i32_1 = arith.constant 0 : i32
    return %c0_i32, %c0_i32_0 : i32, i32
  }
  func.func @transform_2(%arg0: i32) -> (i32, i32) {
    %c0_i32 = arith.constant 0 : i32
    %c0_i32_0 = arith.constant 0 : i32
    %c0_i32_1 = arith.constant 0 : i32
    return %c0_i32, %c0_i32_0 : i32, i32
  }
  func.func @transform_3(%arg0: i32) -> (i32, i32) {
    %c0_i32 = arith.constant 0 : i32
    %c0_i32_0 = arith.constant 0 : i32
    %c0_i32_1 = arith.constant 0 : i32
    return %c0_i32, %c0_i32_0 : i32, i32
  }
  func.func @transform_4(%arg0: i32) -> (i32, i32) {
    %c0_i32 = arith.constant 0 : i32
    %c0_i32_0 = arith.constant 0 : i32
    %c0_i32_1 = arith.constant 0 : i32
    return %c0_i32, %c0_i32_0 : i32, i32
  }
  func.func @transform_5(%arg0: i32) -> (i32, i32) {
    %c0_i32 = arith.constant 0 : i32
    %c0_i32_0 = arith.constant 0 : i32
    %c0_i32_1 = arith.constant 0 : i32
    return %c0_i32, %c0_i32_0 : i32, i32
  }
  func.func @transform_6(%arg0: i32) -> (i32, i32) {
    %c0_i32 = arith.constant 0 : i32
    %c0_i32_0 = arith.constant 0 : i32
    %c0_i32_1 = arith.constant 0 : i32
    return %c0_i32, %c0_i32_0 : i32, i32
  }
  func.func @transform_7(%arg0: i32) -> (i32, i32) {
    %c0_i32 = arith.constant 0 : i32
    %c0_i32_0 = arith.constant 0 : i32
    %c0_i32_1 = arith.constant 0 : i32
    return %c0_i32, %c0_i32_0 : i32, i32
  }
  func.func @transform_8(%arg0: i32) -> (i32, i32) {
    %c0_i32 = arith.constant 0 : i32
    %c0_i32_0 = arith.constant 0 : i32
    %c0_i32_1 = arith.constant 0 : i32
    return %c0_i32, %c0_i32_0 : i32, i32
  }
  func.func @transform_9(%arg0: i32) -> (i32, i32) {
    %c0_i32 = arith.constant 0 : i32
    %c0_i32_0 = arith.constant 0 : i32
    %c0_i32_1 = arith.constant 0 : i32
    return %c0_i32, %c0_i32_0 : i32, i32
  }
  func.func @transform_10(%arg0: i32) -> (i32, i32) {
    %c0_i32 = arith.constant 0 : i32
    %c0_i32_0 = arith.constant 0 : i32
    %c0_i32_1 = arith.constant 0 : i32
    return %c0_i32, %c0_i32_0 : i32, i32
  }
  func.func @transform_11(%arg0: i32) -> (i32, i32) {
    %c0_i32 = arith.constant 0 : i32
    %c0_i32_0 = arith.constant 0 : i32
    return %arg0, %c0_i32 : i32, i32
  }
}

</mosaic_0001>

<bundles_post_ra>
// kernel: tpu_custom_call.1
= control target key start
LH: loop header
LB: loop body
LE: loop exit
PB: predicated region body
PF: predicated region fallthrough
CT: control target
= control target key end

     0   :  { %16 = vsyncpa [#allocation3], 0  ;;  %s1811_s0 = inlined_call_operand.hbm [shape: bf16[8,768], index: 0, kind: input, shape index: {}]   ;;  %s1812_s1 = inlined_call_operand.hbm [shape: bf16[768,128], index: 1, kind: input, shape index: {}]   ;;  %s1813_s2 = inlined_call_operand.vmem [shape: f32[1,128], index: 2, kind: input, shape index: {}]   ;;  %s1814_s3 = inlined_call_operand.hbm [shape: bf16[128,128], index: 3, kind: input, shape index: {}]   ;;  %s1815_s4 = inlined_call_operand.vmem [shape: f32[1,128], index: 4, kind: input, shape index: {}]   ;;  %s1816_s5 = inlined_call_operand.hbm [shape: bf16[128,128], index: 5, kind: input, shape index: {}]   ;;  %s1817_s6 = inlined_call_operand.vmem [shape: f32[1,128], index: 6, kind: input, shape index: {}]   ;;  %s1818_s7 = inlined_call_operand.hbm [shape: bf16[128,128], index: 7, kind: input, shape index: {}]   ;;  %s1819_s8 = inlined_call_operand.vmem [shape: f32[1,128], index: 8, kind: input, shape index: {}]   ;;  %s1820_s9 = inlined_call_operand.hbm [shape: bf16[128,128], index: 9, kind: input, shape index: {}]   ;;  %s1821_s10 = inlined_call_operand.vmem [shape: f32[1,128], index: 10, kind: input, shape index: {}]   ;;  %s1822_s11 = inlined_call_operand.hbm [shape: f32[8,128], index: 11, kind: output, shape index: {}]  }
   0x1   :  { %17 = vsyncpa [#allocation6], 0 }
   0x2   :  { %18 = vsyncpa [#allocation9], 0 }
   0x3   :  { %19 = vsyncpa [#allocation12], 0 }
   0x4   :  { %20 = vsyncpa [#allocation4], 0  ;;  %s1649_s17 = smov [#allocation5]  }
   0x5   :  { %s36_s18 = sshll.u32 %s1649_s17, 4  ;;  %s37_s18 = int_to_ptr.vmem [resolvable:$true] %s36_s18 }
   0x6   :  { %s1507_s19 = scalar_lea.vmem %s37_s18, 6144  ;;  %p1512_p1 = scmp.lt.s32.totalorder %s37_s18, %s37_s18 }
   0x7   :  { %p1508_p0 = scmp.ne.s32.totalorder %s37_s18, %s1507_s19  ;;  %p1513_p2 = scmp.lt.s32.totalorder %s1507_s19, %s1507_s19 }
   0x9   :  { %p1514_p3 = por %p1513_p2, %p1512_p1 }
   0xb   :  { %p1515_p4 = pnand %p1514_p3, %p1508_p0 }
   0xd   :  { %1518 = shalt.err (!%p1515_p4)
}
   0xe   :  { %s1650_s20 = smov 64   ;;  %s1651_s21 = smov 4  }
   0xf   :  { %42 = dma.hbm_to_vmem [thread:$0]  %s1812_s1, 6144, %s37_s18, [#allocation6], %s1650_s20, %s1650_s20, %s1651_s21  }
  0x10   :  { %s1652_s24 = smov [#allocation8]   ;;  %s1653_s26 = smov [#allocation2]  }
  0x11   :  { %s64_s25 = sshll.u32 %s1652_s24, 4  ;;  %s27_s27 = sshll.u32 %s1653_s26, 4  ;;  %s65_s25 = int_to_ptr.vmem [resolvable:$true] %s64_s25  ;;  %s28_s27 = int_to_ptr.vmem [resolvable:$true] %s27_s27 }
  0x12   :  { %s1527_s28 = scalar_lea.vmem %s65_s25, 1024  ;;  %p1532_p6 = scmp.lt.s32.totalorder %s65_s25, %s65_s25 }
  0x13   :  { %p1528_p5 = scmp.ne.s32.totalorder %s65_s25, %s1527_s28  ;;  %p1533_p7 = scmp.lt.s32.totalorder %s1527_s28, %s1527_s28 }
  0x15   :  { %p1534_p8 = por %p1533_p7, %p1532_p6 }
  0x17   :  { %p1535_p9 = pnand %p1534_p8, %p1528_p5 }
  0x19   :  { %1538 = shalt.err (!%p1535_p9)
}
  0x1a   :  { %70 = dma.hbm_to_vmem [thread:$0]  %s1816_s5, 1024, %s65_s25, [#allocation9], %s1650_s20, %s1650_s20, %s1651_s21  }
  0x1b   :  { %s1547_s1 = scalar_lea.vmem %s28_s27, 384  ;;  %p1552_p11 = scmp.lt.s32.totalorder %s28_s27, %s28_s27 }
  0x1c   :  { %p1548_p10 = scmp.ne.s32.totalorder %s28_s27, %s1547_s1  ;;  %p1553_p12 = scmp.lt.s32.totalorder %s1547_s1, %s1547_s1 }
  0x1e   :  { %p1554_p13 = por %p1553_p12, %p1552_p11 }
  0x20   :  { %p1555_p0 = pnand %p1554_p13, %p1548_p10 }
  0x22   :  { %1558 = shalt.err (!%p1555_p0)
}
  0x23   :  { %30 = dma.hbm_to_vmem [thread:$0]  %s1811_s0, 384, %s28_s27, [#allocation3]  }
  0x24   :  { %s1654_s14 = smov [#allocation7]   ;;  %s1655_s16 = smov [#allocation10]  }
  0x25   :  { %s50_s15 = sshll.u32 %s1654_s14, 4  ;;  %s78_s17 = sshll.u32 %s1655_s16, 4  ;;  %s51_s15 = int_to_ptr.vmem [resolvable:$true] %s50_s15  ;;  %s79_s17 = int_to_ptr.vmem [resolvable:$true] %s78_s17 }
  0x26   :  { %s1567_s18 = scalar_lea.vmem %s51_s15, 1024  ;;  %p1572_p2 = scmp.lt.s32.totalorder %s51_s15, %s51_s15 }
  0x27   :  { %p1568_p1 = scmp.ne.s32.totalorder %s51_s15, %s1567_s18  ;;  %p1573_p3 = scmp.lt.s32.totalorder %s1567_s18, %s1567_s18 }
  0x29   :  { %p1574_p4 = por %p1573_p3, %p1572_p2 }
  0x2b   :  { %p1575_p5 = pnand %p1574_p4, %p1568_p1 }
  0x2d   :  { %1578 = shalt.err (!%p1575_p5)
}
  0x2e   :  { %56 = dma.hbm_to_vmem [thread:$0]  %s1814_s3, 1024, %s51_s15, [#allocation6], %s1650_s20, %s1650_s20, %s1651_s21  }
  0x2f   :  { %s1587_s0 = scalar_lea.vmem %s79_s17, 1024  ;;  %p1592_p7 = scmp.lt.s32.totalorder %s79_s17, %s79_s17 }
  0x30   :  { %p1588_p6 = scmp.ne.s32.totalorder %s79_s17, %s1587_s0  ;;  %p1593_p8 = scmp.lt.s32.totalorder %s1587_s0, %s1587_s0 }
  0x32   :  { %p1594_p9 = por %p1593_p8, %p1592_p7 }
  0x34   :  { %p1595_p10 = pnand %p1594_p9, %p1588_p6 }
  0x36   :  { %1598 = shalt.err (!%p1595_p10)
}
  0x37   :  { %84 = dma.hbm_to_vmem [thread:$0]  %s1818_s7, 1024, %s79_s17, [#allocation9], %s1650_s20, %s1650_s20, %s1651_s21  }
  0x38   :  { %s1656_s24 = smov [#allocation11]  }
  0x39   :  { %s92_s25 = sshll.u32 %s1656_s24, 4  ;;  %s93_s25 = int_to_ptr.vmem [resolvable:$true] %s92_s25 }
  0x3a   :  { %s1607_s26 = scalar_lea.vmem %s93_s25, 1024  ;;  %p1612_p12 = scmp.lt.s32.totalorder %s93_s25, %s93_s25 }
  0x3b   :  { %p1608_p11 = scmp.ne.s32.totalorder %s93_s25, %s1607_s26  ;;  %p1613_p13 = scmp.lt.s32.totalorder %s1607_s26, %s1607_s26 }
  0x3d   :  { %p1614_p0 = por %p1613_p13, %p1612_p12 }
  0x3f   :  { %p1615_p1 = pnand %p1614_p0, %p1608_p11 }
  0x41   :  { %1618 = shalt.err (!%p1615_p1)
}
  0x42   :  { %98 = dma.hbm_to_vmem [thread:$0]  %s1820_s9, 1024, %s93_s25, [#allocation12], %s1650_s20, %s1650_s20, %s1651_s21  }
  0x43   :  { %1639 = dma.done.wait [#allocation3], 384  }
  0x44   :  { %1640 = vsyncadd [#allocation3], 4294966912 }
  0x45   :  { %1641 = dma.done.wait [#allocation6], 7168  }
  0x46   :  { %1642 = vsyncadd [#allocation6], 4294960128 }
  0x47   :  { %1643 = dma.done.wait [#allocation9], 2048  }
  0x48   :  { %1644 = vsyncadd [#allocation9], 4294965248 }
  0x49   :  { %1645 = dma.done.wait [#allocation12], 1024  }
  0x4a   :  { %1646 = vsyncadd [#allocation12], 4294966272  ;;  %v1413_v0 = vld [vmem:[#allocation5 + $0x78] sm:$0xff]   ;;  %v1417_v4 = vld [vmem:[#allocation5 + $0x70] sm:$0xff]   ;;  %v1657_v58 = vmov 0.0   ;;  %vm1658_vm0 = vmmov 0  }
  0x4b   :  { %v1414_v1 = vld [vmem:[#allocation5 + $0x38] sm:$0xff]   ;;  %1220 = vmatprep.subr.bf16.mxu0 %v1413_v0  ;;  %v1418_v5 = vld [vmem:[#allocation5 + $0x30] sm:$0xff]   ;;  %v1421_v8 = vld [vmem:[#allocation5 + $0x68] sm:$0xff]   ;;  %s1659_s1 = smov [#allocation13]  }
  0x4c   :  { %v1415_v2 = vld [vmem:[#allocation5 + $0xf8] sm:$0xff]   ;;  %1221 = vmatpush3.bf16.msra.mxu0 %v1414_v1  ;;  %v1419_v6 = vld [vmem:[#allocation5 + $0xf0] sm:$0xff]   ;;  %v1422_v9 = vld [vmem:[#allocation5 + $0x28] sm:$0xff]   ;;  %s1117_s12 = sshll.u32 %s1659_s1, 4  ;;  %s1118_s12 = int_to_ptr.vmem [resolvable:$true] %s1117_s12 }
  0x4d   :  { %v1416_v3 = vld [vmem:[#allocation5 + $0xb8] sm:$0xff]   ;;  %1242 = vmatprep.subr.bf16.mxu1 %v1415_v2  ;;  %1222 = vmatprep.subr.bf16.mxu0 %v1417_v4  ;;  %v1420_v7 = vld [vmem:[#allocation5 + $0xb0] sm:$0xff]   ;;  %v1423_v10 = vld [vmem:[#allocation5 + $0xe8] sm:$0xff]   ;;  %p1624_p3 = scmp.lt.s32.totalorder %s1118_s12, %s1118_s12 }
  0x4e   :  { %1243 = vmatpush3.bf16.msra.mxu1 %v1416_v3  ;;  %v1424_v11 = vld [vmem:[#allocation5 + $0xa8] sm:$0xff]   ;;  %v1425_v12 = vld [vmem:[#allocation5 + $0x60] sm:$0xff]   ;;  %v1429_v16 = vld [vmem:[#allocation5 + $0x58] sm:$0xff]  }
  0x4f   :  { %1244 = vmatprep.subr.bf16.mxu1 %v1419_v6  ;;  %v1426_v13 = vld [vmem:[#allocation5 + $0x20] sm:$0xff]   ;;  %v1430_v17 = vld [vmem:[#allocation5 + $0x18] sm:$0xff]   ;;  %v1433_v20 = vld [vmem:[#allocation5 + $0x50] sm:$0xff]  }
  0x50   :  { %1223 = vmatpush3.bf16.msra.mxu0 %v1418_v5  ;;  %v1427_v14 = vld [vmem:[#allocation5 + $0xe0] sm:$0xff]   ;;  %v1431_v18 = vld [vmem:[#allocation5 + $0xd8] sm:$0xff]   ;;  %v1434_v21 = vld [vmem:[#allocation5 + $0x10] sm:$0xff]  }
  0x51   :  { %1224 = vmatprep.subr.bf16.mxu0 %v1421_v8  ;;  %v1428_v15 = vld [vmem:[#allocation5 + $0xa0] sm:$0xff]   ;;  %v1432_v19 = vld [vmem:[#allocation5 + $0x98] sm:$0xff]   ;;  %v1435_v22 = vld [vmem:[#allocation5 + $0xd0] sm:$0xff]  }
  0x52   :  { %1245 = vmatpush3.bf16.msra.mxu1 %v1420_v7  ;;  %v1436_v23 = vld [vmem:[#allocation5 + $0x90] sm:$0xff]   ;;  %v1437_v24 = vld [vmem:[#allocation5 + $0x48] sm:$0xff]   ;;  %v1441_v28 = vld [vmem:[#allocation5 + $0x40] sm:$0xff]  }
  0x53   :  { %1246 = vmatprep.subr.bf16.mxu1 %v1423_v10  ;;  %v1438_v25 = vld [vmem:[#allocation5 + $0x8] sm:$0xff]   ;;  %v1442_v29 = vld [vmem:[#allocation5] sm:$0xff]   ;;  %v1447_v35 = vld [vmem:[#allocation5 + $0x178] sm:$0xff]  }
  0x54   :  { %1225 = vmatpush3.bf16.msra.mxu0 %v1422_v9  ;;  %v1439_v26 = vld [vmem:[#allocation5 + $0xc8] sm:$0xff]   ;;  %v1443_v30 = vld [vmem:[#allocation5 + $0xc0] sm:$0xff]   ;;  %v121_v36 = vld [vmem:[#allocation2 + $0x8] sm:$0xff] }
  0x55   :  { %1226 = vmatprep.subr.bf16.mxu0 %v1425_v12  ;;  %v1440_v27 = vld [vmem:[#allocation5 + $0x88] sm:$0xff]   ;;  %v1446_v34 = vld [vmem:[#allocation5 + $0x80] sm:$0xff]   ;;  %v1132_v37 = vcombine.low %v121_v36, %v121_v36  ;;  %v1133_v38 = vcombine.high %v121_v36, %v121_v36  ;;  %v1450_v39 = vld [vmem:[#allocation5 + $0x138] sm:$0xff]  }
  0x56   :  { %1247 = vmatpush3.bf16.msra.mxu1 %v1424_v11  ;;  %v120_v31 = vld [vmem:[#allocation2] sm:$0xff]  ;;  %v1451_v40 = vld [vmem:[#allocation5 + $0x170] sm:$0xff]   ;;  %v1455_v44 = vld [vmem:[#allocation5 + $0x160] sm:$0xff]  }
  0x57   :  { %1248 = vmatprep.subr.bf16.mxu1 %v1427_v14  ;;  %v1130_v32 = vcombine.low %v120_v31, %v120_v31  ;;  %v1131_v33 = vcombine.high %v120_v31, %v120_v31  ;;  %607 = vmatprep.mubr.bf16.mxu1 %v1133_v38  ;;  %v1452_v41 = vld [vmem:[#allocation5 + $0x130] sm:$0xff]   ;;  %v1453_v42 = vld [vmem:[#allocation5 + $0x168] sm:$0xff]   ;;  %v1456_v45 = vld [vmem:[#allocation5 + $0x120] sm:$0xff]  }
  0x58   :  { %1227 = vmatpush3.bf16.msra.mxu0 %v1426_v13  ;;  %v1454_v43 = vld [vmem:[#allocation5 + $0x128] sm:$0xff]   ;;  %v1457_v46 = vld [vmem:[#allocation5 + $0x158] sm:$0xff]   ;;  %v1459_v48 = vld [vmem:[#allocation5 + $0x150] sm:$0xff]  }
  0x59   :  { %1228 = vmatprep.subr.bf16.mxu0 %v1429_v16  ;;  %567 = vmatprep.mubr.bf16.mxu0 %v1131_v33  ;;  %v1458_v47 = vld [vmem:[#allocation5 + $0x118] sm:$0xff]   ;;  %v1460_v51 = vld [vmem:[#allocation5 + $0x110] sm:$0xff]   ;;  %v1461_v52 = vld [vmem:[#allocation5 + $0x148] sm:$0xff]  }
  0x5a   :  { %1249 = vmatpush3.bf16.msra.mxu1 %v1428_v15  ;;  %v122_v49 = vld [vmem:[#allocation2 + $0x10] sm:$0xff]  ;;  %v1462_v53 = vld [vmem:[#allocation5 + $0x108] sm:$0xff]   ;;  %v1463_v54 = vld [vmem:[#allocation5 + $0x140] sm:$0xff]  }
  0x5b   :  { %1250 = vmatprep.subr.bf16.mxu1 %v1431_v18  ;;  %v1135_v50 = vcombine.high %v122_v49, %v122_v49  ;;  %v1464_v55 = vld [vmem:[#allocation5 + $0x100] sm:$0xff]   ;;  %v1134_v56 = vcombine.low %v122_v49, %v122_v49  ;;  %v1467_v57 = vld [vmem:[#allocation7 + $0x38] sm:$0xff]   ;;  %v1468_v59 = vld [vmem:[#allocation7 + $0x30] sm:$0xff]  }
  0x5c   :  { %1229 = vmatpush3.bf16.msra.mxu0 %v1430_v17  ;;  %v1469_v60 = vld [vmem:[#allocation7 + $0x28] sm:$0xff]   ;;  %v1470_v61 = vld [vmem:[#allocation7 + $0x20] sm:$0xff]   ;;  %v1471_v62 = vld [vmem:[#allocation7 + $0x18] sm:$0xff]  }
  0x5d   :  { %1230 = vmatprep.subr.bf16.mxu0 %v1433_v20  ;;  %v1472_v63 = vld [vmem:[#allocation7 + $0x10] sm:$0xff]   ;;  %v1473_v0 = vld [vmem:[#allocation7 + $0x8] sm:$0xff]   ;;  %v1474_v1 = vld [vmem:[#allocation7] sm:$0xff]  }
  0x5e   :  { %1251 = vmatpush3.bf16.msra.mxu1 %v1432_v19  ;;  %v1475_v2 = vld [vmem:[#allocation8 + $0x38] sm:$0xff]   ;;  %v1476_v3 = vld [vmem:[#allocation8 + $0x30] sm:$0xff]   ;;  %v1477_v4 = vld [vmem:[#allocation8 + $0x28] sm:$0xff]  }
  0x5f   :  { %1252 = vmatprep.subr.bf16.mxu1 %v1435_v22  ;;  %v1478_v5 = vld [vmem:[#allocation8 + $0x20] sm:$0xff]   ;;  %v1479_v6 = vld [vmem:[#allocation8 + $0x18] sm:$0xff]   ;;  %v1480_v7 = vld [vmem:[#allocation8 + $0x10] sm:$0xff]  }
  0x60   :  { %1231 = vmatpush3.bf16.msra.mxu0 %v1434_v21  ;;  %v1129_v17 = vld [vmem:[%s1813_s2] ss:$0 sm:$0xff]  ;;  %v1483_v31 = vld [vmem:[#allocation10 + $0x38] sm:$0xff]   ;;  %v1488_v36 = vld [vmem:[#allocation10 + $0x10] sm:$0xff]  }
  0x61   :  { %1232 = vmatprep.subr.bf16.mxu0 %v1437_v24  ;;  %v1485_v33 = vld [vmem:[#allocation10 + $0x28] sm:$0xff]   ;;  %v1492_v49 = vld [vmem:[#allocation11 + $0x30] sm:$0xff]  }
  0x62   :  { %1253 = vmatpush3.bf16.msra.mxu1 %v1436_v23 }
  0x63   :  { %1254 = vmatprep.subr.bf16.mxu1 %v1439_v26 }
  0x64   :  { %1233 = vmatpush3.bf16.msra.mxu0 %v1438_v25 }
  0x65   :  { %1234 = vmatprep.subr.bf16.mxu0 %v1441_v28 }
  0x66   :  { %1255 = vmatpush3.bf16.msra.mxu1 %v1440_v27 }
  0x67   :  { %1256 = vmatprep.subr.bf16.mxu1 %v1443_v30  ;;  %v1482_v30 = vld [vmem:[#allocation8] sm:$0xff]  }
  0x68   :  { %1235 = vmatpush3.bf16.msra.mxu0 %v1442_v29  ;;  %v1481_v29 = vld [vmem:[#allocation8 + $0x8] sm:$0xff]  }
  0x69   :  { %1264 = vmatprep.subr.bf16.mxu0 %v1447_v35  ;;  %v1487_v35 = vld [vmem:[#allocation10 + $0x18] sm:$0xff]  }
  0x6a   :  { %1257 = vmatpush3.bf16.msra.mxu1 %v1446_v34  ;;  %v1486_v34 = vld [vmem:[#allocation10 + $0x20] sm:$0xff]  }
  0x6b   :  { %568 = vmatmul.mubr.bf16.vlgmr.msra.gmra.mxu0 %v1130_v32  ;;  %1322 = vmatprep.subr.bf16.mxu1 %v1657_v58  ;;  %v1484_v32 = vld [vmem:[#allocation10 + $0x30] sm:$0xff]  }
  0x6c   :  { %1265 = vmatpush3.bf16.msra.mxu0 %v1450_v39  ;;  %647 = vmatprep.mubr.bf16.mxu0 %v1135_v50  ;;  %v1493_v50 = vld [vmem:[#allocation11 + $0x28] sm:$0xff]  }
  0x6d   :  { %608 = vmatmul.mubr.bf16.vlgmr.msra.gmra.mxu1 %v1132_v37  ;;  %1266 = vmatprep.subr.bf16.mxu0 %v1451_v40  ;;  %v1184_v37 = vld [vmem:[%s1815_s4] ss:$0 sm:$0xff] }
  0x6e   :  { %1323 = vmatpush3.bf16.msra.mxu1 %v1467_v57  ;;  %1338 = vmatprep.mubr.msk.bf16.mxu1 %vm1658_vm0, %v1657_v58 }
  0x6f   :  { %1324 = vmatprep.subr.bf16.mxu1 %v1657_v58 }
  0x70   :  { %1267 = vmatpush3.bf16.msra.mxu0 %v1452_v41 }
  0x71   :  { %1268 = vmatprep.subr.bf16.mxu0 %v1453_v42 }
  0x72   :  { %1325 = vmatpush3.bf16.msra.mxu1 %v1468_v59 }
  0x73   :  { %1326 = vmatprep.subr.bf16.mxu1 %v1657_v58 }
  0x74   :  { %1269 = vmatpush3.bf16.msra.mxu0 %v1454_v43 }
  0x75   :  { %1270 = vmatprep.subr.bf16.mxu0 %v1455_v44 }
  0x76   :  { %1327 = vmatpush3.bf16.msra.mxu1 %v1469_v60 }
  0x77   :  { %1328 = vmatprep.subr.bf16.mxu1 %v1657_v58 }
  0x78   :  { %1271 = vmatpush3.bf16.msra.mxu0 %v1456_v45 }
  0x79   :  { %1272 = vmatprep.subr.bf16.mxu0 %v1457_v46  ;;  %v1489_v46 = vld [vmem:[#allocation10 + $0x8] sm:$0xff]  }
  0x7a   :  { %1329 = vmatpush3.bf16.msra.mxu1 %v1470_v61 }
  0x7b   :  { %1330 = vmatprep.subr.bf16.mxu1 %v1657_v58 }
  0x7c   :  { %1273 = vmatpush3.bf16.msra.mxu0 %v1458_v47  ;;  %v1490_v47 = vld [vmem:[#allocation10] sm:$0xff]  }
  0x7d   :  { %1274 = vmatprep.subr.bf16.mxu0 %v1459_v48  ;;  %v1491_v48 = vld [vmem:[#allocation11 + $0x38] sm:$0xff]  }
  0x7e   :  { %1331 = vmatpush3.bf16.msra.mxu1 %v1471_v62 }
  0x7f   :  { %1332 = vmatprep.subr.bf16.mxu1 %v1657_v58 }
  0x80   :  { %1275 = vmatpush3.bf16.msra.mxu0 %v1460_v51  ;;  %v1494_v51 = vld [vmem:[#allocation11 + $0x20] sm:$0xff]  }
  0x81   :  { %1276 = vmatprep.subr.bf16.mxu0 %v1461_v52  ;;  %v1495_v52 = vld [vmem:[#allocation11 + $0x18] sm:$0xff]  }
  0x82   :  { %1333 = vmatpush3.bf16.msra.mxu1 %v1472_v63 }
  0x83   :  { %1334 = vmatprep.subr.bf16.mxu1 %v1657_v58 }
  0x84   :  { %1277 = vmatpush3.bf16.msra.mxu0 %v1462_v53  ;;  %v1496_v53 = vld [vmem:[#allocation11 + $0x10] sm:$0xff]  }
  0x85   :  { %1278 = vmatprep.subr.bf16.mxu0 %v1463_v54  ;;  %v1193_v54 = vld [vmem:[%s1817_s6] ss:$0 sm:$0xff] }
  0x86   :  { %1335 = vmatpush3.bf16.msra.mxu1 %v1473_v0  ;;  %v1497_v0 = vld [vmem:[#allocation11 + $0x8] sm:$0xff]  }
  0x87   :  { %1336 = vmatprep.subr.bf16.mxu1 %v1657_v58 }
  0x88   :  { %1279 = vmatpush3.bf16.msra.mxu0 %v1464_v55 }
  0x89   :  { %1342 = vmatprep.subr.bf16.mxu0 %v1657_v58 }
  0x8a   :  { %1337 = vmatpush3.bf16.msra.mxu1 %v1474_v1  ;;  %v1498_v1 = vld [vmem:[#allocation11] sm:$0xff]  }
  0x8b   :  { %648 = vmatmul.mubr.bf16.vlgmr.msra.gmra.mxu0 %v1134_v56  ;;  %1362 = vmatprep.subr.bf16.mxu1 %v1657_v58 }
  0x8c   :  { %1358 = vmatprep.mubr.msk.bf16.mxu0 %vm1658_vm0, %v1657_v58  ;;  %1343 = vmatpush3.bf16.msra.mxu0 %v1475_v2  ;;  %v1202_v2 = vld [vmem:[%s1819_s8] ss:$0 sm:$0xff]  ;;  %s1619_s8 = scalar_lea.vmem %s1118_s12, 128 }
  0x8d   :  { %1344 = vmatprep.subr.bf16.mxu0 %v1657_v58  ;;  %p1620_p2 = scmp.ne.s32.totalorder %s1118_s12, %s1619_s8  ;;  %p1625_p4 = scmp.lt.s32.totalorder %s1619_s8, %s1619_s8 }
  0x8f   :  { %p1626_p5 = por %p1625_p4, %p1624_p3 }
  0x90   :  { %1345 = vmatpush3.bf16.msra.mxu0 %v1476_v3 }
  0x91   :  { %1346 = vmatprep.subr.bf16.mxu0 %v1657_v58  ;;  %p1627_p6 = pnand %p1626_p5, %p1620_p2 }
  0x94   :  { %1347 = vmatpush3.bf16.msra.mxu0 %v1477_v4 }
  0x95   :  { %1348 = vmatprep.subr.bf16.mxu0 %v1657_v58 }
  0x98   :  { %1349 = vmatpush3.bf16.msra.mxu0 %v1478_v5 }
  0x99   :  { %1350 = vmatprep.subr.bf16.mxu0 %v1657_v58 }
  0x9c   :  { %1351 = vmatpush3.bf16.msra.mxu0 %v1479_v6 }
  0x9d   :  { %1352 = vmatprep.subr.bf16.mxu0 %v1657_v58 }
  0xa0   :  { %1353 = vmatpush3.bf16.msra.mxu0 %v1480_v7 }
  0xa1   :  { %1354 = vmatprep.subr.bf16.mxu0 %v1657_v58 }
  0xa4   :  { %1355 = vmatpush3.bf16.msra.mxu0 %v1481_v29 }
  0xa5   :  { %1356 = vmatprep.subr.bf16.mxu0 %v1657_v58 }
  0xa8   :  { %1357 = vmatpush3.bf16.msra.mxu0 %v1482_v30 }
  0xa9   :  { %1382 = vmatprep.subr.bf16.mxu0 %v1657_v58 }
 0x12b   :  { %v1236_v8 = vpop.f32.mrf.mxu0 }
 0x12d   :  { %v1237_v9 = vpop.f32.mrf.mxu0  ;;  %v1258_v10 = vpop.f32.mrf.mxu1 }
 0x12e   :  { %v1238_v16 = vadd.f32 %v1237_v9, %v1236_v8 }
 0x12f   :  { %v1239_v11 = vpop.f32.mrf.mxu0  ;;  %v1259_v12 = vpop.f32.mrf.mxu1 }
 0x130   :  { %v570_v18 = vadd.f32 %v1238_v16, %v1129_v17  ;;  %v1260_v19 = vadd.f32 %v1259_v12, %v1258_v10  ;;  %v1211_v11 = vld [vmem:[%s1821_s10] ss:$0 sm:$0xff] }
 0x131   :  { %v1240_v13 = vpop.f32.mrf.mxu0  ;;  %v1261_v14 = vpop.f32.mrf.mxu1 }
 0x132   :  { %v610_v22 = vadd.f32 %v1260_v19, %v570_v18 }
 0x133   :  { %v1262_v15 = vpop.f32.mrf.mxu1 }
 0x14b   :  { %v1280_v20 = vpop.f32.mrf.mxu0 }
 0x14d   :  { %v1281_v21 = vpop.f32.mrf.mxu0 }
 0x14e   :  { %v1282_v23 = vadd.f32 %v1281_v21, %v1280_v20 }
 0x14f   :  { %v1283_v24 = vpop.f32.mrf.mxu0 }
 0x150   :  { %v650_v25 = vadd.f32 %v1282_v23, %v610_v22 }
 0x151   :  { %v1284_v26 = vpop.f32.mrf.mxu0 }
 0x152   :  { %v655_v27 = vmax.f32 %v650_v25, 0.0 }
 0x154   :  { %v656_v28 = vpack.c.bf16 %v655_v27, %v655_v27 }
 0x156   :  { %1339 = vmatmul.mubr.bf16.vlgmr.msra.gmra.mxu1 %v656_v28 }
 0x157   :  { %1378 = vmatprep.mubr.msk.bf16.mxu1 %vm1658_vm0, %v1657_v58  ;;  %1363 = vmatpush3.bf16.msra.mxu1 %v1483_v31 }
 0x158   :  { %1364 = vmatprep.subr.bf16.mxu1 %v1657_v58 }
 0x15b   :  { %1365 = vmatpush3.bf16.msra.mxu1 %v1484_v32 }
 0x15c   :  { %1366 = vmatprep.subr.bf16.mxu1 %v1657_v58 }
 0x15f   :  { %1367 = vmatpush3.bf16.msra.mxu1 %v1485_v33 }
 0x160   :  { %1368 = vmatprep.subr.bf16.mxu1 %v1657_v58 }
 0x163   :  { %1369 = vmatpush3.bf16.msra.mxu1 %v1486_v34 }
 0x164   :  { %1370 = vmatprep.subr.bf16.mxu1 %v1657_v58 }
 0x167   :  { %1371 = vmatpush3.bf16.msra.mxu1 %v1487_v35 }
 0x168   :  { %1372 = vmatprep.subr.bf16.mxu1 %v1657_v58 }
 0x16b   :  { %1373 = vmatpush3.bf16.msra.mxu1 %v1488_v36 }
 0x16c   :  { %1374 = vmatprep.subr.bf16.mxu1 %v1657_v58 }
 0x16f   :  { %1375 = vmatpush3.bf16.msra.mxu1 %v1489_v46 }
 0x170   :  { %1376 = vmatprep.subr.bf16.mxu1 %v1657_v58 }
 0x173   :  { %1377 = vmatpush3.bf16.msra.mxu1 %v1490_v47 }
 0x216   :  { %v762_v38 = vpop.f32.mrf.mxu1 }
 0x217   :  { %v763_v39 = vadd.f32 %v1184_v37, %v762_v38 }
 0x218   :  { %v1340_v40 = vpop.f32.mrf.mxu1 }
 0x219   :  { %v768_v41 = vmax.f32 %v763_v39, 0.0 }
 0x21a   :  { %v765_v42 = vpop.f32.mrf.mxu1 }
 0x21b   :  { %v769_v43 = vadd.f32 %v768_v41, %v655_v27 }
 0x21c   :  { %v1341_v44 = vpop.f32.mrf.mxu1 }
 0x21d   :  { %v770_v45 = vpack.c.bf16 %v769_v43, %v769_v43 }
 0x21f   :  { %1359 = vmatmul.mubr.bf16.vlgmr.msra.gmra.mxu0 %v770_v45 }
 0x220   :  { %1398 = vmatprep.mubr.msk.bf16.mxu0 %vm1658_vm0, %v1657_v58  ;;  %1383 = vmatpush3.bf16.msra.mxu0 %v1491_v48 }
 0x221   :  { %1384 = vmatprep.subr.bf16.mxu0 %v1657_v58 }
 0x224   :  { %1385 = vmatpush3.bf16.msra.mxu0 %v1492_v49 }
 0x225   :  { %1386 = vmatprep.subr.bf16.mxu0 %v1657_v58 }
 0x228   :  { %1387 = vmatpush3.bf16.msra.mxu0 %v1493_v50 }
 0x229   :  { %1388 = vmatprep.subr.bf16.mxu0 %v1657_v58 }
 0x22c   :  { %1389 = vmatpush3.bf16.msra.mxu0 %v1494_v51 }
 0x22d   :  { %1390 = vmatprep.subr.bf16.mxu0 %v1657_v58 }
 0x230   :  { %1391 = vmatpush3.bf16.msra.mxu0 %v1495_v52 }
 0x231   :  { %1392 = vmatprep.subr.bf16.mxu0 %v1657_v58 }
 0x234   :  { %1393 = vmatpush3.bf16.msra.mxu0 %v1496_v53 }
 0x235   :  { %1394 = vmatprep.subr.bf16.mxu0 %v1657_v58 }
 0x238   :  { %1395 = vmatpush3.bf16.msra.mxu0 %v1497_v0 }
 0x239   :  { %1396 = vmatprep.subr.bf16.mxu0 %v1657_v58 }
 0x23c   :  { %1397 = vmatpush3.bf16.msra.mxu0 %v1498_v1 }
 0x2df   :  { %v876_v55 = vpop.f32.mrf.mxu0 }
 0x2e0   :  { %v877_v56 = vadd.f32 %v1193_v54, %v876_v55 }
 0x2e1   :  { %v1360_v57 = vpop.f32.mrf.mxu0 }
 0x2e2   :  { %v882_v59 = vmax.f32 %v877_v56, 0.0 }
 0x2e3   :  { %v879_v60 = vpop.f32.mrf.mxu0 }
 0x2e4   :  { %v883_v61 = vadd.f32 %v882_v59, %v769_v43 }
 0x2e5   :  { %v1361_v62 = vpop.f32.mrf.mxu0 }
 0x2e6   :  { %v884_v63 = vpack.c.bf16 %v883_v61, %v883_v61 }
 0x2e8   :  { %1379 = vmatmul.mubr.bf16.vlgmr.msra.gmra.mxu1 %v884_v63 }
 0x3a8   :  { %v990_v3 = vpop.f32.mrf.mxu1 }
 0x3a9   :  { %v991_v4 = vadd.f32 %v1202_v2, %v990_v3 }
 0x3aa   :  { %v1380_v5 = vpop.f32.mrf.mxu1 }
 0x3ab   :  { %v996_v6 = vmax.f32 %v991_v4, 0.0 }
 0x3ac   :  { %v993_v7 = vpop.f32.mrf.mxu1 }
 0x3ad   :  { %v997_v8 = vadd.f32 %v996_v6, %v883_v61 }
 0x3ae   :  { %v1381_v9 = vpop.f32.mrf.mxu1 }
 0x3af   :  { %v998_v10 = vpack.c.bf16 %v997_v8, %v997_v8 }
 0x3b1   :  { %1399 = vmatmul.mubr.bf16.vlgmr.msra.gmra.mxu0 %v998_v10 }
 0x471   :  { %v1104_v58 = vpop.f32.mrf.mxu0 }
 0x472   :  { %v1105_v12 = vadd.f32 %v1211_v11, %v1104_v58 }
 0x473   :  { %v1400_v13 = vpop.f32.mrf.mxu0 }
 0x474   :  { %1110 = vst [vmem:[#allocation13] sm:$0xff] %v1105_v12 }
 0x475   :  { %v1107_v14 = vpop.f32.mrf.mxu0 }
 0x476   :  { %1630 = shalt.err (!%p1627_p6)
}
 0x477   :  { %1120 = dma.vmem_to_hbm [thread:$0]  %s1118_s12, 128, %s1822_s11, [#allocation4]   ;;  %v1401_v15 = vpop.f32.mrf.mxu0 }
 0x478   :  { %1647 = dma.done.wait [#allocation4], 128  }
 0x479   :  { %1648 = vsyncadd [#allocation4], 4294967168 }
 0x47a   :  { %1124 = vsyncpa [#allocation3], 1 }
 0x47b   :  { %1125 = vsyncpa [#allocation6], 1 }
 0x47c   :  { %1126 = vsyncpa [#allocation9], 1 }
 0x47d   :  { %1127 = vsyncpa [#allocation12], 1 }
 0x47e   :  { %1128 = vsyncpa [#allocation4], 1 }

</bundles_post_ra>
